<compile_context>
chip_gen: v6e
topology: v6e:2x2x1
jax: 0.10.0
libtpu: 0.0.40
codegen_flags: <defaults>
</compile_context>

<pallas_src>
import jax
import jax.numpy as jnp
from jax.experimental import pallas as pl
from jax.experimental.pallas import tpu as pltpu


def _round_up(a, b):
    return (a + b - 1) // b * b


def _vmem_capacity_bytes():
    try:
        cap = getattr(pltpu.get_tpu_info(), "vmem_capacity_bytes", None)
        if cap:
            return int(cap)
    except Exception:
        pass
    return 64 * 1024 * 1024  # conservative (v7x-sized) default


def _choose_tiling(NC, HW, x_item, t_item, sub_mult):
    """Pick row-split S, block (ROWS, TILE) and vmem limit from a byte budget."""
    # Row split: give the "parallel" row axis >= 2 blocks when N*C alone is too
    # small (v7x megacore).  Only applied when it divides H*W exactly.
    S = 1
    if NC < 2 * sub_mult:
        for cand in (2, 4, 8, 16, 32):
            if HW % cand == 0 and NC * cand >= 2 * sub_mult:
                S = cand
                break
    NCS, HWS = NC * S, HW // S

    vmem_cap = _vmem_capacity_bytes()
    # 48 MiB on 64-MiB v7x, 96 MiB on 128-MiB v5e/v6e.
    vmem_limit = min(vmem_cap * 3 // 4, 96 * 1024 * 1024)
    # Per-element VMEM: double-buffered copies of both inputs plus ~3
    # block-sized f32 temporaries for the in-kernel math.
    per_elem = 2 * (x_item + t_item) + 3 * 4
    budget_elems = max(vmem_limit // per_elem, sub_mult * 128)

    # Lane-dense tile first (>= 2048 f32 per row segment keeps DMA efficient),
    # then spend the remaining budget on rows.
    tile_full = _round_up(HWS, 128)
    TILE = min(tile_full, max(2048, (budget_elems // sub_mult) // 128 * 128))
    TILE = max(TILE, 128)

    rows_full = _round_up(NCS, sub_mult)
    if rows_full >= 2 * sub_mult:
        rows_cap = _round_up(pl.cdiv(NCS, 2), sub_mult)  # keep >= 2 row blocks
    else:
        rows_cap = rows_full                             # single block; accept
    ROWS = min(rows_cap, max(sub_mult, (budget_elems // TILE) // sub_mult * sub_mult))

    return S, NCS, HWS, ROWS, TILE, vmem_limit


def _make_kernel(n_rows_valid, n_cols_valid, rows, tile, n_row_blocks, n_tiles):
    """Accumulate per-row sums of [t*log(x) + (1-t)*log(1-x)] over the tile axis."""
    need_row_mask = (n_rows_valid % rows) != 0
    need_col_mask = (n_cols_valid % tile) != 0

    def kernel(x_ref, t_ref, o_ref):
        @pl.when(pl.program_id(1) == 0)
        def _init():
            o_ref[...] = jnp.zeros_like(o_ref)

        x = x_ref[...].astype(jnp.float32)
        t = t_ref[...].astype(jnp.float32)
        # torch.nn.BCELoss clamps each log term at -100.
        log_x = jnp.maximum(jnp.log(x), -100.0)
        log_1mx = jnp.maximum(jnp.log(1.0 - x), -100.0)
        # t*log_x + (1-t)*log_1mx == log_1mx + t*(log_x - log_1mx)
        # (negation + scaling are hoisted to the JAX epilogue).
        val = log_1mx + t * (log_x - log_1mx)

        if not (need_row_mask or need_col_mask):
            o_ref[...] += jnp.sum(val, axis=1, keepdims=True)
        else:
            conds = []
            if need_row_mask:
                conds.append(pl.program_id(0) == n_row_blocks - 1)
            if need_col_mask:
                conds.append(pl.program_id(1) == n_tiles - 1)
            on_edge = conds[0] if len(conds) == 1 else (conds[0] | conds[1])

            @pl.when(jnp.logical_not(on_edge))
            def _interior():
                o_ref[...] += jnp.sum(val, axis=1, keepdims=True)

            @pl.when(on_edge)
            def _edge():
                mask = None
                if need_row_mask:
                    rid = jax.lax.broadcasted_iota(jnp.int32, (rows, 1), 0)
                    mask = (rid + pl.program_id(0) * rows) < n_rows_valid
                if need_col_mask:
                    cid = jax.lax.broadcasted_iota(jnp.int32, (1, tile), 1)
                    cm = (cid + pl.program_id(1) * tile) < n_cols_valid
                    mask = cm if mask is None else (mask & cm)
                o_ref[...] += jnp.sum(jnp.where(mask, val, 0.0), axis=1, keepdims=True)

    return kernel


@jax.jit
def robust_cross_entropy_loss(inp, target, weight):
    """inp, target: (N, C, H, W); weight: (C,).  Returns scalar f32 loss."""
    N, C, H, W = inp.shape
    assert target.shape == inp.shape
    NC, HW = N * C, H * W

    x_item = jnp.dtype(inp.dtype).itemsize
    t_item = jnp.dtype(target.dtype).itemsize
    sub_mult = max(32 // x_item, 32 // t_item, 8)

    S, NCS, HWS, ROWS, TILE, vmem_limit = _choose_tiling(NC, HW, x_item, t_item, sub_mult)
    n_row_blocks = pl.cdiv(NCS, ROWS)
    n_tiles = pl.cdiv(HWS, TILE)
    out_rows = n_row_blocks * ROWS

    # Free, contiguous reshape: each (n, c) row is split into S sub-rows.
    x2 = inp.reshape(NCS, HWS)
    t2 = target.reshape(NCS, HWS)

    n_elems = N * C * H * W
    cost = pl.CostEstimate(
        flops=7 * n_elems,
        transcendentals=2 * n_elems,
        bytes_accessed=n_elems * (x_item + t_item) + out_rows * 4,
    )

    kernel = _make_kernel(NCS, HWS, ROWS, TILE, n_row_blocks, n_tiles)

    partial = pl.pallas_call(
        kernel,
        out_shape=jax.ShapeDtypeStruct((out_rows, 1), jnp.float32),
        grid=(n_row_blocks, n_tiles),
        in_specs=[
            pl.BlockSpec((ROWS, TILE), lambda r, t: (r, t)),
            pl.BlockSpec((ROWS, TILE), lambda r, t: (r, t)),
        ],
        out_specs=pl.BlockSpec((ROWS, 1), lambda r, t: (r, 0)),
        compiler_params=pltpu.CompilerParams(
            dimension_semantics=("parallel", "arbitrary"),
            vmem_limit_bytes=int(vmem_limit),
        ),
        cost_estimate=cost,
    )(x2, t2)

    # Tiny epilogue in plain JAX: per-sub-row sums -> per-channel sums ->
    # weighted channel mean; negation and 1/(N*H*W*C) folded in here.
    weight = jnp.asarray(weight, dtype=jnp.float32)
    row_sums = partial[:NCS, 0]                            # (N*C*S,)
    ch_sums = row_sums.reshape(N, C, S).sum(axis=(0, 2))   # (C,)
    # TODO(synk): if targets were guaranteed hard {0,1}, a single-log fast path
    # would halve EUP work on v7x; not assumed because targets are floats.
    return -jnp.dot(ch_sums, weight) / jnp.float32(C * N * HW)


if __name__ == "__main__":
    key = jax.random.PRNGKey(0)
    k1, k2 = jax.random.split(key)

    N, C, H, W = 2, 4, 16, 16

    # BCELoss expects probabilities in (0, 1): use sigmoid of random logits.
    logits = jax.random.normal(k1, (N, C, H, W), dtype=jnp.float32)
    inp = jax.nn.sigmoid(logits)
    # Target: float, same shape (compatibility-layer semantics).
    target = (jax.random.uniform(k2, (N, C, H, W)) > 0.5).astype(jnp.float32)

    # Deterministic default weights: [1.0] * n_classes (as in __init__).
    weight = jnp.ones((C,), dtype=jnp.float32)

    loss = robust_cross_entropy_loss(inp, target, weight)
    loss = jax.block_until_ready(loss)

    # Pure-JAX reference (mirrors the PyTorch forward loop).
    def ref(inp, target, weight):
        total = 0.0
        for ch in range(target.shape[1]):
            x = inp[:, ch]
            t = target[:, ch]
            bce = -(t * jnp.maximum(jnp.log(x), -100.0)
                    + (1.0 - t) * jnp.maximum(jnp.log(1.0 - x), -100.0))
            total += jnp.mean(bce) * weight[ch]
        return total / target.shape[1]

    ref_loss = ref(inp, target, weight)
    assert jnp.allclose(loss, ref_loss, rtol=1e-5, atol=1e-6), (loss, ref_loss)

    print("KERNEL_OK")
</pallas_src>

<mosaic_0001>
module attributes {stable_mosaic.version = 11 : i64} {
  func.func @kernel(%arg0: i32, %arg1: i32, %arg2: memref<8x128xf32, #tpu.memory_space<vmem>>, %arg3: memref<8x128xf32, #tpu.memory_space<vmem>>, %arg4: memref<8x1xf32, #tpu.memory_space<vmem>>) attributes {dimension_semantics = [#tpu.dimension_semantics<parallel>, #tpu.dimension_semantics<arbitrary>], iteration_bounds = array<i64: 2, 1>, scalar_prefetch = 0 : i64, scratch_operands = 0 : i64, tpu.core_type = #tpu.core_type<tc>, window_params = [{transform_indices = @transform_0, window_bounds = array<i64: 8, 128>}, {transform_indices = @transform_1, window_bounds = array<i64: 8, 128>}, {transform_indices = @transform_2, window_bounds = array<i64: 8, 1>}]} {
    %c0_i32 = arith.constant 0 : i32
    %0 = arith.cmpi eq, %arg1, %c0_i32 : i32
    %1 = arith.extui %0 : i1 to i32
    %c0_i32_0 = arith.constant 0 : i32
    %2 = arith.cmpi ne, %1, %c0_i32_0 : i32
    scf.if %2 {
      %cst_11 = arith.constant 0.000000e+00 : f32
      %21 = vector.broadcast %cst_11 : f32 to vector<8x1xf32>
      %c0_12 = arith.constant 0 : index
      %c0_13 = arith.constant 0 : index
      %22 = vector.load %arg4[%c0_12, %c0_13] : memref<8x1xf32, #tpu.memory_space<vmem>>, vector<8x1xf32>
      tpu.vector_store %arg4[%c0_12, %c0_13], %21 {strides = array<i32>} : memref<8x1xf32, #tpu.memory_space<vmem>>, vector<8x1xf32>,
    } else {
    }
    %c0 = arith.constant 0 : index
    %c0_1 = arith.constant 0 : index
    %3 = vector.load %arg2[%c0, %c0_1] : memref<8x128xf32, #tpu.memory_space<vmem>>, vector<8x128xf32>
    %c0_2 = arith.constant 0 : index
    %c0_3 = arith.constant 0 : index
    %4 = vector.load %arg3[%c0_2, %c0_3] : memref<8x128xf32, #tpu.memory_space<vmem>>, vector<8x128xf32>
    %5 = math.log %3 : vector<8x128xf32>
    %cst = arith.constant -1.000000e+02 : f32
    %6 = vector.broadcast %cst : f32 to vector<8x128xf32>
    %7 = arith.maximumf %5, %6 : vector<8x128xf32>
    %cst_4 = arith.constant 1.000000e+00 : f32
    %8 = vector.broadcast %cst_4 : f32 to vector<8x128xf32>
    %9 = arith.subf %8, %3 : vector<8x128xf32>
    %10 = math.log %9 : vector<8x128xf32>
    %cst_5 = arith.constant -1.000000e+02 : f32
    %11 = vector.broadcast %cst_5 : f32 to vector<8x128xf32>
    %12 = arith.maximumf %10, %11 : vector<8x128xf32>
    %13 = arith.subf %7, %12 : vector<8x128xf32>
    %14 = arith.mulf %4, %13 : vector<8x128xf32>
    %15 = arith.addf %12, %14 : vector<8x128xf32>
    %c0_6 = arith.constant 0 : index
    %c0_7 = arith.constant 0 : index
    %16 = vector.load %arg4[%c0_6, %c0_7] : memref<8x1xf32, #tpu.memory_space<vmem>>, vector<8x1xf32>
    %cst_8 = arith.constant dense<0.000000e+00> : vector<8xf32>
    %17 = vector.multi_reduction <add>, %15, %cst_8 [1] : vector<8x128xf32> to vector<8xf32>
    %18 = vector.shape_cast %17 : vector<8xf32> to vector<8x1xf32>
    %19 = arith.addf %16, %18 : vector<8x1xf32>
    %c0_9 = arith.constant 0 : index
    %c0_10 = arith.constant 0 : index
    %20 = vector.load %arg4[%c0_9, %c0_10] : memref<8x1xf32, #tpu.memory_space<vmem>>, vector<8x1xf32>
    tpu.vector_store %arg4[%c0_9, %c0_10], %19 {strides = array<i32>} : memref<8x1xf32, #tpu.memory_space<vmem>>, vector<8x1xf32>,
    return
  }
  func.func @transform_0(%arg0: i32, %arg1: i32) -> (i32, i32) {
    %c0_i32 = arith.constant 0 : i32
    return %arg0, %arg1 : i32, i32
  }
  func.func @transform_1(%arg0: i32, %arg1: i32) -> (i32, i32) {
    %c0_i32 = arith.constant 0 : i32
    return %arg0, %arg1 : i32, i32
  }
  func.func @transform_2(%arg0: i32, %arg1: i32) -> (i32, i32) {
    %c0_i32 = arith.constant 0 : i32
    %c0_i32_0 = arith.constant 0 : i32
    return %arg0, %c0_i32 : i32, i32
  }
}

</mosaic_0001>

<bundles_post_ra>
// kernel: squeeze.1
= control target key start
LH: loop header
LB: loop body
LE: loop exit
PB: predicated region body
PF: predicated region fallthrough
CT: control target
= control target key end

     0   :  { %s75_s8 = smov 122   ;;  %vm8_vm0 = vcmask 15360   ;;  %s76_s9 = smov 124   ;;  %s108_s0 = inlined_call_operand.vmem [shape: f32[16], index: 0, kind: input, shape index: {}]   ;;  %s109_s1 = inlined_call_operand.vmem [shape: f32[2,4,2], index: 1, kind: output, shape index: {}]  }
   0x1   :  { %v5_v0 = vld [vmem:[%s108_s0] sm:$0x1]  ;;  %s74_s0 = smov 126   ;;  %s77_s10 = smov 120  }
   0x2   :  { %6 = vst [vmem:[#allocation1] sm:$0x1] %v5_v0  ;;  %s78_s11 = smov 118   ;;  %s79_s12 = smov 116  }
   0x3   :  { %s80_s13 = smov 114  }
   0x9   :  { %v10_v1 = vld [vmem:[#allocation1] sm:$0x1]  }
   0xa   :  { %v22_v2 = vld [vmem:[#allocation1] sm:$0x1]   ;;  %11 = vrot.lane.b32.xlu0 %v10_v1, %s74_s0 }
   0xb   :  { %23 = vrot.lane.b32.xlu1 %v22_v2, %s75_s8  ;;  %v16_v3 = vld [vmem:[#allocation1] sm:$0x1]  }
   0xc   :  { %v28_v4 = vld [vmem:[#allocation1] sm:$0x1]  }
   0xd   :  { %v7_v5 = vld [vmem:[#allocation1] sm:$0x1]  }
   0xe   :  { %9 = vst.msk [vmem:[#allocation0] sm:$0x1] %vm8_vm0, %v7_v5   ;;  %17 = vrot.lane.b32.xlu0 %v16_v3, %s76_s9  ;;  %v34_v6 = vld [vmem:[#allocation1] sm:$0x1]  }
   0xf   :  { %29 = vrot.lane.b32.xlu1 %v28_v4, %s77_s10  ;;  %v40_v7 = vld [vmem:[#allocation1] sm:$0x1]  }
  0x10   :  { %v46_v8 = vld [vmem:[#allocation1] sm:$0x1]  }
  0x12   :  { %35 = vrot.lane.b32.xlu0 %v34_v6, %s78_s11 }
  0x13   :  { %41 = vrot.lane.b32.xlu1 %v40_v7, %s79_s12 }
  0x16   :  { %47 = vrot.lane.b32.xlu0 %v46_v8, %s80_s13 }
  0x7c   :  { %v12_v9 = vpop.permute.xlu0 %11  }
  0x7d   :  { %v24_v10 = vpop.permute.xlu1 %23   ;;  %15 = vst.msk [vmem:[#allocation0 + $0x1] sm:$0x1] %vm8_vm0, %v12_v9  }
  0x7e   :  { %27 = vst.msk [vmem:[#allocation0 + $0x3] sm:$0x1] %vm8_vm0, %v24_v10  }
  0x80   :  { %v18_v11 = vpop.permute.xlu0 %17  }
  0x81   :  { %v30_v12 = vpop.permute.xlu1 %29   ;;  %21 = vst.msk [vmem:[#allocation0 + $0x2] sm:$0x1] %vm8_vm0, %v18_v11  }
  0x82   :  { %33 = vst.msk [vmem:[#allocation0 + $0x8] sm:$0x1] %vm8_vm0, %v30_v12  }
  0x84   :  { %v36_v13 = vpop.permute.xlu0 %35  }
  0x85   :  { %v42_v14 = vpop.permute.xlu1 %41   ;;  %39 = vst.msk [vmem:[#allocation0 + $0x9] sm:$0x1] %vm8_vm0, %v36_v13  }
  0x86   :  { %45 = vst.msk [vmem:[#allocation0 + $0xa] sm:$0x1] %vm8_vm0, %v42_v14  }
  0x88   :  { %v56_v15 = vld [vmem:[#allocation0] sm:$0xf]  ;;  %v48_v16 = vpop.permute.xlu0 %47  }
  0x89   :  { %59 = vst [vmem:[%s109_s1] sm:$0xf] %v56_v15  ;;  %51 = vst.msk [vmem:[#allocation0 + $0xb] sm:$0x1] %vm8_vm0, %v48_v16  }
  0x90   :  { %v61_v17 = vld [vmem:[#allocation0 + $0x8] sm:$0xf] }
  0x91   :  { %66 = vst [vmem:[%s109_s1 + $0x4] sm:$0xf] %v61_v17 }

// kernel: robust_cross_entropy_loss.1
= control target key start
LH: loop header
LB: loop body
LE: loop exit
PB: predicated region body
PF: predicated region fallthrough
CT: control target
= control target key end

     0   :  { %s372_s9 = smov 0   ;;  %s374_s10 = smov 0   ;;  %s410_s0 = inlined_call_operand.vmem [shape: f32[16,128], index: 0, kind: input, shape index: {}]   ;;  %s411_s1 = inlined_call_operand.vmem [shape: f32[16,128], index: 1, kind: input, shape index: {}]   ;;  %s412_s2 = inlined_call_operand.vmem [shape: f32[16,1], index: 2, kind: output, shape index: {}]  }
   0x1   :  { %s376_s11 = smov 0  }
   0x2 LB: > { %s24_s12 = sadd.s32 1, %s350_s10  ;;  %p297_p0 = scmp.ge.s32.totalorder %s354_s11, 1  ;;  %s354_s11 = sphi %s376_s11, %s12_s11   ;;  %s350_s10 = sphi %s374_s10, %s414_s10   ;;  %s346_s9 = sphi %s372_s9, %s413_s9  }
   0x3   : > { %p26_p1 = scmp.ge.s32.totalorder %s24_s12, 2  ;;  %p142_p2 = scmp.lt.s32.totalorder %s354_s11, 3 }
   0x5   : > { %s416_s12 = smov (%p26_p1, %s24_s12), 0  ;;  %p143_p3 = pnand %p297_p0, %p142_p2 }
   0x6   : > { %p172_p4 = scmp.lt.s32.totalorder (!%p143_p3), %s346_s9, 1 }
   0x7   : > { %146 = sbr.rel (%p143_p3) target bundleno = 183 (0xb7), region = 28 }
   0xc   : > { %s418_s9 = smov (!%p172_p4, %s346_s9), 1  ;;  %vm194_vm0 = vcmask 7168   ;;  %v356_v2 = vmov 0.0  }
   0xd   : > { %s298_s13 = sshll.u32 %s418_s9, 3 }
   0xe   : > { %s178_s16 = scalar_lea.vmem %s410_s0, %s298_s13  ;;  %s189_s19 = scalar_lea.vmem %s412_s2, %s298_s13 }
   0xf   : > { %v196_v0 = vld [vmem:[%s178_s16] sm:$0xff]  ;;  %195 = vst.msk [vmem:[%s189_s19] sm:$0xff] %vm194_vm0, %v356_v2  ;;  %s185_s22 = scalar_lea.vmem %s411_s1, %s298_s13 }
  0x10   : > { %328 = vlog2.f32 %v196_v0  ;;  %v201_v1 = vsub.f32 1.0, %v196_v0  ;;  %v197_v9 = vld [vmem:[%s185_s22] sm:$0xff] }
  0x12   : > { %330 = vlog2.f32 %v201_v1 }
  0x16   : > { %v208_v13 = vld [vmem:[%s189_s19] sm:$0xff] }
  0x1d   : > { %v329_v3 = vpop.eup %328 }
  0x1e   : > { %v199_v4 = vmul.f32 0.6931472, %v329_v3 }
  0x1f   : > { %v331_v5 = vpop.eup %330 }
  0x20   : > { %v200_v6 = vmax.f32 %v199_v4, -100.0  ;;  %v203_v7 = vmul.f32 0.6931472, %v331_v5 }
  0x22   : > { %v204_v8 = vmax.f32 %v203_v7, -100.0 }
  0x24   : > { %v205_v10 = vsub.f32 %v200_v6, %v204_v8 }
  0x26   : > { %v206_v11 = vmul.f32 %v205_v10, %v197_v9 }
  0x28   : > { %v207_v12 = vadd.f32 %v206_v11, %v204_v8 }
  0x2a   : > { %209 = vadd.xlane.f32.xlu0 %v207_v12 }
  0xb3   : > { %v210_v14 = vpop.xlane.xlu0 %209 }
  0xb4   : > { %v211_v15 = vadd.f32 %v210_v14, %v208_v13 }
  0xb6   : > { %213 = vst.msk [vmem:[%s189_s19] sm:$0xff] %vm194_vm0, %v211_v15 }
  0xb7 PF: > { %s12_s11 = sadd.s32 1, %s354_s11   ;;  %s413_s9 = smov %s350_s10 }
  0xb8   : > { %p9_p5 = scmp.ge.s32.totalorder %s12_s11, 4   ;;  %s414_s10 = smov %s416_s12 }
  0xba   :  { %11 = sbr.rel (!%p9_p5) target bundleno = 2 (0x2), region = 65 }

</bundles_post_ra>
